<compile_context>
chip_gen: v6e
topology: v6e:2x2x1
jax: 0.10.0
libtpu: 0.0.40
codegen_flags: <defaults>
</compile_context>

<pallas_src>
import jax
import jax.numpy as jnp
from jax.experimental import pallas as pl
from jax.experimental.pallas import tpu as pltpu


# ------------------------------ in-kernel math -------------------------------
def _block_xent_sum(logits, tgt_col, valid_rows):
    """Sum of per-row softmax cross-entropy over one (tile, C) block.

    logits: (tile, C) any float dtype (cast to f32 here), tgt_col: (tile, 1) i32,
    valid_rows: (tile, 1) bool mask or None. Returns (1, 1) f32 partial sum.
    Class axis is lane-dense; batch reduction is a sublane reduction.
    """
    x = logits.astype(jnp.float32)
    m = jnp.max(x, axis=-1, keepdims=True)                              # (t,1)
    shifted = x - m                                                     # (t,C)
    lse = jnp.log(jnp.sum(jnp.exp(shifted), axis=-1, keepdims=True))    # (t,1)
    # (1, C) class-index row, broadcast against (t, 1) targets -> no (t, C) iota.
    cls = jax.lax.broadcasted_iota(jnp.int32, (1, x.shape[-1]), 1)
    tgt = jnp.sum(jnp.where(cls == tgt_col, shifted, 0.0),
                  axis=-1, keepdims=True)                               # (t,1)
    per_row = lse - tgt                                                 # (t,1)
    if valid_rows is not None:
        per_row = jnp.where(valid_rows, per_row, 0.0)
    return jnp.sum(per_row, axis=0, keepdims=True)                      # (1,1)


def _row_mask(tile, n_rows):
    row_ids = pl.program_id(0) * tile + jax.lax.broadcasted_iota(
        jnp.int32, (tile, 1), 0)
    return row_ids < n_rows


# --------------------------------- kernels -----------------------------------
def _make_train_kernel(n_rows, tile):
    num_blocks = pl.cdiv(n_rows, tile)
    ragged = (n_rows % tile) != 0

    def kernel(con_ref, con_t_ref, img_ref, img_t_ref, lv_ref,
               out_ref, con_acc, img_acc):
        i = pl.program_id(0)

        @pl.when(i == 0)
        def _():
            con_acc[...] = jnp.zeros_like(con_acc)
            img_acc[...] = jnp.zeros_like(img_acc)

        valid = _row_mask(tile, n_rows) if ragged else None
        con_acc[...] += _block_xent_sum(con_ref[...], con_t_ref[...], valid)
        img_acc[...] += _block_xent_sum(img_ref[...], img_t_ref[...], valid)

        @pl.when(i == num_blocks - 1)
        def _():
            inv_n = jnp.float32(1.0 / n_rows)
            con_loss = con_acc[...] * inv_n                             # (1,1)
            img_loss = img_acc[...] * inv_n                             # (1,1)
            lv0 = jnp.full((1, 1), lv_ref[0], dtype=jnp.float32)
            lv1 = jnp.full((1, 1), lv_ref[1], dtype=jnp.float32)
            out_ref[...] = (jnp.exp(-lv0) * con_loss + lv0
                            + jnp.exp(-lv1) * img_loss + lv1)

    return kernel, num_blocks


def _make_eval_kernel(n_rows, tile):
    num_blocks = pl.cdiv(n_rows, tile)
    ragged = (n_rows % tile) != 0

    def kernel(img_ref, img_t_ref, out_ref, img_acc):
        i = pl.program_id(0)

        @pl.when(i == 0)
        def _():
            img_acc[...] = jnp.zeros_like(img_acc)

        valid = _row_mask(tile, n_rows) if ragged else None
        img_acc[...] += _block_xent_sum(img_ref[...], img_t_ref[...], valid)

        @pl.when(i == num_blocks - 1)
        def _():
            out_ref[...] = img_acc[...] * jnp.float32(1.0 / n_rows)

    return kernel, num_blocks


# --------------------------------- wrapper ------------------------------------
def _tile_rows(n, bytes_per_row, budget_bytes=8 << 20, override=None):
    """Rows per block: biggest multiple of 8 (<=512) fitting the per-stage VMEM
    budget (conservative so 2x double-buffering fits v7x's 64 MiB VMEM too)."""
    if override is not None:
        t = override
    else:
        t = (budget_bytes // max(1, bytes_per_row)) // 8 * 8
        t = max(8, min(512, t))
    return n if n <= t else t


def multitask_loss_forward(con_output, con_target, image_output, image_target,
                           log_vars, phase, tile_override=None):
    """Mirror of MultiTaskLossWrapper.forward; `phase` is a static string."""
    img_logits = image_output                      # native dtype: no f32 HBM copy
    img_tgt = image_target.astype(jnp.int32).reshape(-1, 1)
    n_img, c_img = img_logits.shape

    if phase == "train":
        con_logits = con_output                    # native dtype
        con_tgt = con_target.astype(jnp.int32).reshape(-1, 1)
        n_con, c_con = con_logits.shape
        if n_con != n_img:
            raise ValueError("train phase assumes a shared minibatch")
        n = n_img
        bytes_per_row = (c_con * con_logits.dtype.itemsize
                         + c_img * img_logits.dtype.itemsize + 8)
        tile = _tile_rows(n, bytes_per_row, override=tile_override)
        kernel, num_blocks = _make_train_kernel(n, tile)
        lv = log_vars.astype(jnp.float32).reshape(-1)

        cost = pl.CostEstimate(
            flops=int(5 * n * (c_con + c_img)),
            transcendentals=int(n * (c_con + c_img + 2) + 2),
            bytes_accessed=int(con_logits.size * con_logits.dtype.itemsize
                               + img_logits.size * img_logits.dtype.itemsize
                               + 2 * n * 4 + 2 * 4 + 4))

        out = pl.pallas_call(
            kernel,
            out_shape=jax.ShapeDtypeStruct((1, 1), jnp.float32),
            grid=(num_blocks,),
            in_specs=[
                pl.BlockSpec((tile, c_con), lambda i: (i, 0)),
                pl.BlockSpec((tile, 1), lambda i: (i, 0)),
                pl.BlockSpec((tile, c_img), lambda i: (i, 0)),
                pl.BlockSpec((tile, 1), lambda i: (i, 0)),
                pl.BlockSpec(memory_space=pltpu.MemorySpace.SMEM),
            ],
            out_specs=pl.BlockSpec((1, 1), lambda i: (0, 0)),
            scratch_shapes=[pltpu.VMEM((1, 1), jnp.float32),
                            pltpu.VMEM((1, 1), jnp.float32)],
            compiler_params=pltpu.CompilerParams(
                dimension_semantics=("arbitrary",)),
            cost_estimate=cost,
        )(con_logits, con_tgt, img_logits, img_tgt, lv)
    else:
        n = n_img
        bytes_per_row = c_img * img_logits.dtype.itemsize + 4
        tile = _tile_rows(n, bytes_per_row, override=tile_override)
        kernel, num_blocks = _make_eval_kernel(n, tile)

        cost = pl.CostEstimate(
            flops=int(5 * n * c_img),
            transcendentals=int(n * (c_img + 1)),
            bytes_accessed=int(img_logits.size * img_logits.dtype.itemsize
                               + n * 4 + 4))

        out = pl.pallas_call(
            kernel,
            out_shape=jax.ShapeDtypeStruct((1, 1), jnp.float32),
            grid=(num_blocks,),
            in_specs=[
                pl.BlockSpec((tile, c_img), lambda i: (i, 0)),
                pl.BlockSpec((tile, 1), lambda i: (i, 0)),
            ],
            out_specs=pl.BlockSpec((1, 1), lambda i: (0, 0)),
            scratch_shapes=[pltpu.VMEM((1, 1), jnp.float32)],
            compiler_params=pltpu.CompilerParams(
                dimension_semantics=("arbitrary",)),
            cost_estimate=cost,
        )(img_logits, img_tgt)

    return out[0, 0]


# ----------------------------- pure-JAX reference -----------------------------
def _xent_ref(logits, targets):
    logits = logits.astype(jnp.float32)
    lse = jax.scipy.special.logsumexp(logits, axis=-1)
    tgt = jnp.take_along_axis(logits, targets[:, None].astype(jnp.int32),
                              axis=-1)[:, 0]
    return jnp.mean(lse - tgt)


def ref_forward(con_output, con_target, image_output, image_target,
                log_vars, phase):
    img_loss = _xent_ref(image_output, image_target)
    if phase != "train":
        return img_loss
    con_loss = _xent_ref(con_output, con_target)
    loss0 = jnp.exp(-log_vars[0]) * con_loss + log_vars[0]
    loss1 = jnp.exp(-log_vars[1]) * img_loss + log_vars[1]
    return loss0 + loss1


# ----------------------------------- main --------------------------------------
if __name__ == "__main__":
    key = jax.random.PRNGKey(0)
    ks = jax.random.split(key, 8)

    # --- small demo shapes (single-block path) ---
    N, C_CON, C_IMG = 8, 8, 16
    con_output = jax.random.normal(ks[0], (N, C_CON), dtype=jnp.float32)
    con_target = jnp.arange(N, dtype=jnp.int32)          # typical SupCon target
    image_output = jax.random.normal(ks[1], (N, C_IMG), dtype=jnp.float32)
    image_target = jax.random.randint(ks[2], (N,), 0, C_IMG, dtype=jnp.int32)
    log_vars = jnp.array([0.1, -0.2], dtype=jnp.float32)  # non-zero to exercise weighting

    loss_train = jax.block_until_ready(multitask_loss_forward(
        con_output, con_target, image_output, image_target, log_vars, "train"))
    ref_train = ref_forward(
        con_output, con_target, image_output, image_target, log_vars, "train")

    loss_eval = jax.block_until_ready(multitask_loss_forward(
        con_output, con_target, image_output, image_target, log_vars, "val"))
    ref_eval = ref_forward(
        con_output, con_target, image_output, image_target, log_vars, "val")

    # --- multi-block streaming path with ragged last block (forced tile=8) ---
    N2 = 20
    con2 = jax.random.normal(ks[3], (N2, N2), dtype=jnp.float32)
    con_t2 = jnp.arange(N2, dtype=jnp.int32)
    img2 = jax.random.normal(ks[4], (N2, C_IMG), dtype=jnp.float32)
    img_t2 = jax.random.randint(ks[5], (N2,), 0, C_IMG, dtype=jnp.int32)

    loss_rag = jax.block_until_ready(multitask_loss_forward(
        con2, con_t2, img2, img_t2, log_vars, "train", tile_override=8))
    ref_rag = ref_forward(con2, con_t2, img2, img_t2, log_vars, "train")

    loss_rag_eval = jax.block_until_ready(multitask_loss_forward(
        con2, con_t2, img2, img_t2, log_vars, "val", tile_override=8))
    ref_rag_eval = ref_forward(con2, con_t2, img2, img_t2, log_vars, "val")

    # --- bf16 logits: native-dtype DMA, f32 math in-kernel ---
    con_bf16 = con_output.astype(jnp.bfloat16)
    img_bf16 = image_output.astype(jnp.bfloat16)
    loss_bf16 = jax.block_until_ready(multitask_loss_forward(
        con_bf16, con_target, img_bf16, image_target, log_vars, "train"))
    ref_bf16 = ref_forward(con_bf16, con_target, img_bf16, image_target,
                           log_vars, "train")

    assert jnp.isfinite(loss_train) and jnp.isfinite(loss_eval)
    assert jnp.isfinite(loss_rag) and jnp.isfinite(loss_rag_eval)
    assert jnp.isfinite(loss_bf16)
    assert jnp.allclose(loss_train, ref_train, rtol=1e-5, atol=1e-5), (
        loss_train, ref_train)
    assert jnp.allclose(loss_eval, ref_eval, rtol=1e-5, atol=1e-5), (
        loss_eval, ref_eval)
    assert jnp.allclose(loss_rag, ref_rag, rtol=1e-5, atol=1e-5), (
        loss_rag, ref_rag)
    assert jnp.allclose(loss_rag_eval, ref_rag_eval, rtol=1e-5, atol=1e-5), (
        loss_rag_eval, ref_rag_eval)
    assert jnp.allclose(loss_bf16, ref_bf16, rtol=1e-4, atol=1e-4), (
        loss_bf16, ref_bf16)
    print("KERNEL_OK")
</pallas_src>

<mosaic_0001>
module attributes {stable_mosaic.version = 11 : i64} {
  func.func @kernel(%arg0: i32, %arg1: memref<8x8xf32, #tpu.memory_space<vmem>>, %arg2: memref<8x1xi32, #tpu.memory_space<vmem>>, %arg3: memref<8x16xf32, #tpu.memory_space<vmem>>, %arg4: memref<8x1xi32, #tpu.memory_space<vmem>>, %arg5: memref<2xf32, #tpu.memory_space<smem>>, %arg6: memref<1x1xf32, #tpu.memory_space<vmem>>, %arg7: memref<1x1xf32, #tpu.memory_space<vmem>>, %arg8: memref<1x1xf32, #tpu.memory_space<vmem>>) attributes {dimension_semantics = [#tpu.dimension_semantics<arbitrary>], iteration_bounds = array<i64: 1>, scalar_prefetch = 0 : i64, scratch_operands = 2 : i64, tpu.core_type = #tpu.core_type<tc>, window_params = [{transform_indices = @transform_0, window_bounds = array<i64: 8, 8>}, {transform_indices = @transform_1, window_bounds = array<i64: 8, 1>}, {transform_indices = @transform_2, window_bounds = array<i64: 8, 16>}, {transform_indices = @transform_3, window_bounds = array<i64: 8, 1>}, {transform_indices = @transform_4, window_bounds = array<i64: 2>}, {pipeline_mode = #tpu.pipeline_mode<synchronous>, transform_indices = @transform_5, window_bounds = array<i64: 1, 1>}]} {
    %c0_i32 = arith.constant 0 : i32
    %0 = arith.cmpi eq, %arg0, %c0_i32 : i32
    %1 = arith.extui %0 : i1 to i32
    %c0_i32_0 = arith.constant 0 : i32
    %2 = arith.cmpi ne, %1, %c0_i32_0 : i32
    scf.if %2 {
      %cst_27 = arith.constant 0.000000e+00 : f32
      %54 = vector.broadcast %cst_27 : f32 to vector<1x1xf32>
      %c0_28 = arith.constant 0 : index
      %c0_29 = arith.constant 0 : index
      %55 = vector.load %arg7[%c0_28, %c0_29] : memref<1x1xf32, #tpu.memory_space<vmem>>, vector<1x1xf32>
      tpu.vector_store %arg7[%c0_28, %c0_29], %54 {strides = array<i32>} : memref<1x1xf32, #tpu.memory_space<vmem>>, vector<1x1xf32>,
      %cst_30 = arith.constant 0.000000e+00 : f32
      %56 = vector.broadcast %cst_30 : f32 to vector<1x1xf32>
      %c0_31 = arith.constant 0 : index
      %c0_32 = arith.constant 0 : index
      %57 = vector.load %arg8[%c0_31, %c0_32] : memref<1x1xf32, #tpu.memory_space<vmem>>, vector<1x1xf32>
      tpu.vector_store %arg8[%c0_31, %c0_32], %56 {strides = array<i32>} : memref<1x1xf32, #tpu.memory_space<vmem>>, vector<1x1xf32>,
    } else {
    }
    %c0 = arith.constant 0 : index
    %c0_1 = arith.constant 0 : index
    %3 = vector.load %arg7[%c0, %c0_1] : memref<1x1xf32, #tpu.memory_space<vmem>>, vector<1x1xf32>
    %c0_2 = arith.constant 0 : index
    %c0_3 = arith.constant 0 : index
    %4 = vector.load %arg1[%c0_2, %c0_3] : memref<8x8xf32, #tpu.memory_space<vmem>>, vector<8x8xf32>
    %c0_4 = arith.constant 0 : index
    %c0_5 = arith.constant 0 : index
    %5 = vector.load %arg2[%c0_4, %c0_5] : memref<8x1xi32, #tpu.memory_space<vmem>>, vector<8x1xi32>
    %cst = arith.constant dense<0xFF800000> : vector<8xf32>
    %6 = vector.multi_reduction <maximumf>, %4, %cst [1] : vector<8x8xf32> to vector<8xf32>
    %7 = vector.shape_cast %6 : vector<8xf32> to vector<8x1xf32>
    %8 = vector.broadcast %7 : vector<8x1xf32> to vector<8x8xf32>
    %9 = arith.subf %4, %8 : vector<8x8xf32>
    %10 = math.exp %9 : vector<8x8xf32>
    %cst_6 = arith.constant dense<0.000000e+00> : vector<8xf32>
    %11 = vector.multi_reduction <add>, %10, %cst_6 [1] : vector<8x8xf32> to vector<8xf32>
    %12 = vector.shape_cast %11 : vector<8xf32> to vector<8x1xf32>
    %13 = math.log %12 : vector<8x1xf32>
    %14 = tpu.iota {dimensions = array<i32: 1>} : vector<1x8xi32>
    %15 = vector.broadcast %14 : vector<1x8xi32> to vector<8x8xi32>
    %16 = vector.broadcast %5 : vector<8x1xi32> to vector<8x8xi32>
    %17 = arith.cmpi eq, %15, %16 : vector<8x8xi32>
    %cst_7 = arith.constant 0.000000e+00 : f32
    %18 = vector.broadcast %cst_7 : f32 to vector<8x8xf32>
    %19 = arith.select %17, %9, %18 : vector<8x8xi1>, vector<8x8xf32>
    %cst_8 = arith.constant dense<0.000000e+00> : vector<8xf32>
    %20 = vector.multi_reduction <add>, %19, %cst_8 [1] : vector<8x8xf32> to vector<8xf32>
    %21 = vector.shape_cast %20 : vector<8xf32> to vector<8x1xf32>
    %22 = arith.subf %13, %21 : vector<8x1xf32>
    %cst_9 = arith.constant dense<0.000000e+00> : vector<1xf32>
    %23 = vector.multi_reduction <add>, %22, %cst_9 [0] : vector<8x1xf32> to vector<1xf32>
    %24 = vector.shape_cast %23 : vector<1xf32> to vector<1x1xf32>
    %25 = arith.addf %3, %24 : vector<1x1xf32>
    %c0_10 = arith.constant 0 : index
    %c0_11 = arith.constant 0 : index
    %26 = vector.load %arg7[%c0_10, %c0_11] : memref<1x1xf32, #tpu.memory_space<vmem>>, vector<1x1xf32>
    tpu.vector_store %arg7[%c0_10, %c0_11], %25 {strides = array<i32>} : memref<1x1xf32, #tpu.memory_space<vmem>>, vector<1x1xf32>,
    %c0_12 = arith.constant 0 : index
    %c0_13 = arith.constant 0 : index
    %27 = vector.load %arg8[%c0_12, %c0_13] : memref<1x1xf32, #tpu.memory_space<vmem>>, vector<1x1xf32>
    %c0_14 = arith.constant 0 : index
    %c0_15 = arith.constant 0 : index
    %28 = vector.load %arg3[%c0_14, %c0_15] : memref<8x16xf32, #tpu.memory_space<vmem>>, vector<8x16xf32>
    %c0_16 = arith.constant 0 : index
    %c0_17 = arith.constant 0 : index
    %29 = vector.load %arg4[%c0_16, %c0_17] : memref<8x1xi32, #tpu.memory_space<vmem>>, vector<8x1xi32>
    %cst_18 = arith.constant dense<0xFF800000> : vector<8xf32>
    %30 = vector.multi_reduction <maximumf>, %28, %cst_18 [1] : vector<8x16xf32> to vector<8xf32>
    %31 = vector.shape_cast %30 : vector<8xf32> to vector<8x1xf32>
    %32 = vector.broadcast %31 : vector<8x1xf32> to vector<8x16xf32>
    %33 = arith.subf %28, %32 : vector<8x16xf32>
    %34 = math.exp %33 : vector<8x16xf32>
    %cst_19 = arith.constant dense<0.000000e+00> : vector<8xf32>
    %35 = vector.multi_reduction <add>, %34, %cst_19 [1] : vector<8x16xf32> to vector<8xf32>
    %36 = vector.shape_cast %35 : vector<8xf32> to vector<8x1xf32>
    %37 = math.log %36 : vector<8x1xf32>
    %38 = tpu.iota {dimensions = array<i32: 1>} : vector<1x16xi32>
    %39 = vector.broadcast %38 : vector<1x16xi32> to vector<8x16xi32>
    %40 = vector.broadcast %29 : vector<8x1xi32> to vector<8x16xi32>
    %41 = arith.cmpi eq, %39, %40 : vector<8x16xi32>
    %cst_20 = arith.constant 0.000000e+00 : f32
    %42 = vector.broadcast %cst_20 : f32 to vector<8x16xf32>
    %43 = arith.select %41, %33, %42 : vector<8x16xi1>, vector<8x16xf32>
    %cst_21 = arith.constant dense<0.000000e+00> : vector<8xf32>
    %44 = vector.multi_reduction <add>, %43, %cst_21 [1] : vector<8x16xf32> to vector<8xf32>
    %45 = vector.shape_cast %44 : vector<8xf32> to vector<8x1xf32>
    %46 = arith.subf %37, %45 : vector<8x1xf32>
    %cst_22 = arith.constant dense<0.000000e+00> : vector<1xf32>
    %47 = vector.multi_reduction <add>, %46, %cst_22 [0] : vector<8x1xf32> to vector<1xf32>
    %48 = vector.shape_cast %47 : vector<1xf32> to vector<1x1xf32>
    %49 = arith.addf %27, %48 : vector<1x1xf32>
    %c0_23 = arith.constant 0 : index
    %c0_24 = arith.constant 0 : index
    %50 = vector.load %arg8[%c0_23, %c0_24] : memref<1x1xf32, #tpu.memory_space<vmem>>, vector<1x1xf32>
    tpu.vector_store %arg8[%c0_23, %c0_24], %49 {strides = array<i32>} : memref<1x1xf32, #tpu.memory_space<vmem>>, vector<1x1xf32>,
    %c0_i32_25 = arith.constant 0 : i32
    %51 = arith.cmpi eq, %arg0, %c0_i32_25 : i32
    %52 = arith.extui %51 : i1 to i32
    %c0_i32_26 = arith.constant 0 : i32
    %53 = arith.cmpi ne, %52, %c0_i32_26 : i32
    scf.if %53 {
      %c0_27 = arith.constant 0 : index
      %c0_28 = arith.constant 0 : index
      %54 = vector.load %arg7[%c0_27, %c0_28] : memref<1x1xf32, #tpu.memory_space<vmem>>, vector<1x1xf32>
      %cst_29 = arith.constant 1.250000e-01 : f32
      %55 = vector.broadcast %cst_29 : f32 to vector<1x1xf32>
      %56 = arith.mulf %54, %55 : vector<1x1xf32>
      %c0_30 = arith.constant 0 : index
      %c0_31 = arith.constant 0 : index
      %57 = vector.load %arg8[%c0_30, %c0_31] : memref<1x1xf32, #tpu.memory_space<vmem>>, vector<1x1xf32>
      %cst_32 = arith.constant 1.250000e-01 : f32
      %58 = vector.broadcast %cst_32 : f32 to vector<1x1xf32>
      %59 = arith.mulf %57, %58 : vector<1x1xf32>
      %c0_33 = arith.constant 0 : index
      %60 = memref.load %arg5[%c0_33] : memref<2xf32, #tpu.memory_space<smem>>
      %61 = vector.broadcast %60 : f32 to vector<1x1xf32>
      %c1 = arith.constant 1 : index
      %62 = memref.load %arg5[%c1] : memref<2xf32, #tpu.memory_space<smem>>
      %63 = vector.broadcast %62 : f32 to vector<1x1xf32>
      %cst_34 = arith.constant 0.000000e+00 : f32
      %64 = vector.broadcast %cst_34 : f32 to vector<1x1xf32>
      %65 = arith.subf %64, %61 : vector<1x1xf32>
      %66 = math.exp %65 : vector<1x1xf32>
      %67 = arith.mulf %66, %56 : vector<1x1xf32>
      %68 = arith.addf %67, %61 : vector<1x1xf32>
      %cst_35 = arith.constant 0.000000e+00 : f32
      %69 = vector.broadcast %cst_35 : f32 to vector<1x1xf32>
      %70 = arith.subf %69, %63 : vector<1x1xf32>
      %71 = math.exp %70 : vector<1x1xf32>
      %72 = arith.mulf %71, %59 : vector<1x1xf32>
      %73 = arith.addf %68, %72 : vector<1x1xf32>
      %74 = arith.addf %73, %63 : vector<1x1xf32>
      %c0_36 = arith.constant 0 : index
      %c0_37 = arith.constant 0 : index
      %75 = vector.load %arg6[%c0_36, %c0_37] : memref<1x1xf32, #tpu.memory_space<vmem>>, vector<1x1xf32>
      tpu.vector_store %arg6[%c0_36, %c0_37], %74 {strides = array<i32>} : memref<1x1xf32, #tpu.memory_space<vmem>>, vector<1x1xf32>,
    } else {
    }
    return
  }
  func.func @transform_0(%arg0: i32) -> (i32, i32) {
    %c0_i32 = arith.constant 0 : i32
    %c0_i32_0 = arith.constant 0 : i32
    return %arg0, %c0_i32 : i32, i32
  }
  func.func @transform_1(%arg0: i32) -> (i32, i32) {
    %c0_i32 = arith.constant 0 : i32
    %c0_i32_0 = arith.constant 0 : i32
    return %arg0, %c0_i32 : i32, i32
  }
  func.func @transform_2(%arg0: i32) -> (i32, i32) {
    %c0_i32 = arith.constant 0 : i32
    %c0_i32_0 = arith.constant 0 : i32
    return %arg0, %c0_i32 : i32, i32
  }
  func.func @transform_3(%arg0: i32) -> (i32, i32) {
    %c0_i32 = arith.constant 0 : i32
    %c0_i32_0 = arith.constant 0 : i32
    return %arg0, %c0_i32 : i32, i32
  }
  func.func @transform_4(%arg0: i32) -> i32 {
    %c0_i32 = arith.constant 0 : i32
    %c0_i32_0 = arith.constant 0 : i32
    return %c0_i32 : i32
  }
  func.func @transform_5(%arg0: i32) -> (i32, i32) {
    %c0_i32 = arith.constant 0 : i32
    %c0_i32_0 = arith.constant 0 : i32
    %c0_i32_1 = arith.constant 0 : i32
    return %c0_i32, %c0_i32_0 : i32, i32
  }
}

</mosaic_0001>

<bundles_post_ra>
// kernel: tpu_custom_call.1
= control target key start
LH: loop header
LB: loop body
LE: loop exit
PB: predicated region body
PF: predicated region fallthrough
CT: control target
= control target key end

     0   :  { %10 = vsyncpa [#allocation6], 0  ;;  %s270_s0 = inlined_call_operand.vmem [shape: f32[8,8], index: 0, kind: input, shape index: {}]   ;;  %s271_s1 = inlined_call_operand.vmem [shape: s32[8,1], index: 1, kind: input, shape index: {}]   ;;  %s272_s2 = inlined_call_operand.vmem [shape: f32[8,16], index: 2, kind: input, shape index: {}]   ;;  %s273_s3 = inlined_call_operand.vmem [shape: s32[8,1], index: 3, kind: input, shape index: {}]   ;;  %s274_s4 = inlined_call_operand.vmem [shape: f32[2], index: 4, kind: input, shape index: {}]   ;;  %s275_s5 = inlined_call_operand.hbm [shape: f32[1,1], index: 5, kind: output, shape index: {}]  }
   0x1   :  { %11 = vsyncpa [#allocation5], 0  ;;  %s26_s20 = sshll.u32 %s274_s4, 4  ;;  %s27_s20 = int_to_ptr.vmem [resolvable:$true] %s26_s20 }
   0x2   :  { %s165_s21 = scalar_lea.vmem %s27_s20, 16  ;;  %p170_p1 = scmp.lt.s32.totalorder %s27_s20, %s27_s20 }
   0x3   :  { %p166_p0 = scmp.ne.s32.totalorder %s27_s20, %s165_s21  ;;  %p171_p2 = scmp.lt.s32.totalorder %s165_s21, %s165_s21 }
   0x5   :  { %p172_p3 = por %p171_p2, %p170_p1 }
   0x7   :  { %p173_p4 = pnand %p172_p3, %p166_p0 }
   0x9   :  { %176 = shalt.err (!%p173_p4)
}
   0xa   :  { %s201_s22 = smov [#allocation4]  }
   0xb   :  { %29 = dma.vmem_to_smem %s27_s20, 16, %s201_s22, [#allocation6]  }
   0xc   :  { %197 = dma.done.wait [#allocation6], 16  }
   0xd   :  { %198 = vsyncadd [#allocation6], 4294967280 }
   0xe   :  { %33 = sfence }
   0xf   :  { %v42_v0 = vld [vmem:[%s270_s0] sm:$0xff]  ;;  %vm44_vm0 = vcmask 64512   ;;  %vm79_vm1 = vcmask 130048   ;;  %v202_v4 = vmov 0   ;;  %v56_v13 = vlaneseq }
  0x10   :  { %v77_v1 = vld [vmem:[%s272_s2] sm:$0xff]  ;;  %v45_v3 = vsel %vm44_vm0, %v42_v0, -inf  ;;  %151 = vset.pattern.permute.xlu1 %v202_v4  ;;  %152 = vset.pattern.permute.xlu0 %v202_v4  ;;  %vm38_vm4 = vcmask 0   ;;  %v203_v25 = vmov 0.0   ;;  %s260_s2 = sld [smem:[#allocation4 + $0x1]] }
  0x11   :  { %v43_v2 = vld [vmem:[%s271_s1] sm:$0xff]  ;;  %46 = vmax.xlane.f32.xlu0 %v45_v3  ;;  %v80_v5 = vsel %vm79_vm1, %v77_v1, -inf  ;;  %v57_v15 = vand.u32 127, %v56_v13  ;;  %39 = vst.msk [vmem:[#allocation2] sm:$0x1] %vm38_vm4, %v203_v25  ;;  %s258_s1 = sld [smem:[#allocation4]] }
  0x12   :  { %59 = vperm.xlu1 %151, %v43_v2   ;;  %v78_v6 = vld [vmem:[%s273_s3] sm:$0xff]  ;;  %40 = vst.msk [vmem:[#allocation3] sm:$0x1] %vm38_vm4, %v203_v25  ;;  %s204_s3 = smov [#allocation7]  }
  0x13   :  { %s137_s29 = sshll.u32 %s204_s3, 4  ;;  %s138_s29 = int_to_ptr.vmem [resolvable:$true] %s137_s29 }
  0x14   :  { %s177_s30 = scalar_lea.vmem %s138_s29, 16  ;;  %s181_s6 = scalar_lea.vmem %s138_s29, 32 }
  0x15   :  { %81 = vmax.xlane.f32.xlu0 %v80_v5  ;;  %p178_p5 = scmp.ne.s32.totalorder %s138_s29, %s177_s30  ;;  %p182_p6 = scmp.lt.s32.totalorder %s138_s29, %s138_s29 }
  0x16   :  { %92 = vperm.xlu1 %151, %v78_v6   ;;  %v118_v38 = vstv %s260_s2  ;;  %p183_p7 = scmp.lt.s32.totalorder %s181_s6, %s177_s30 }
  0x17   :  { %v116_v31 = vstv %s258_s1  ;;  %v124_v44 = vsub.f32 0.0, %v118_v38 }
  0x18   :  { %v119_v36 = vsub.f32 0.0, %v116_v31  ;;  %v41_v50 = vld [vmem:[#allocation2] sm:$0x1]  ;;  %p184_p8 = por %p183_p7, %p182_p6 }
  0x19   :  { %v125_v49 = vmul.f32 1.442695, %v124_v44  ;;  %v76_v55 = vld [vmem:[#allocation3] sm:$0x1] }
  0x1a   :  { %v120_v43 = vmul.f32 1.442695, %v119_v36  ;;  %p185_p9 = pnand %p184_p8, %p178_p5 }
  0x8d   :  { %v60_v14 = vpop.permute.xlu1 %59 }
  0x8e   :  { %vm61_vm2 = vcmp.eq.s32.totalorder %v57_v15, %v60_v14 }
  0x91   :  { %v93_v17 = vpop.permute.xlu1 %92 }
  0x92   :  { %vm94_vm3 = vcmp.eq.s32.totalorder %v57_v15, %v93_v17 }
  0x9a   :  { %v47_v7 = vpop.xlane.xlu0 %46 }
  0x9b   :  { %v48_v8 = vsub.f32 %v42_v0, %v47_v7 }
  0x9d   :  { %v49_v9 = vmul.f32 1.442695, %v48_v8  ;;  %v62_v19 = vsel %vm61_vm2, %v48_v8, 0.0 }
  0x9e   :  { %v82_v10 = vpop.xlane.xlu0 %81  ;;  %v63_v21 = vsel %vm44_vm0, %v62_v19, 0.0 }
  0x9f   :  { %153 = vpow2.f32 %v49_v9  ;;  %v83_v11 = vsub.f32 %v77_v1, %v82_v10 }
  0xa1   :  { %v84_v12 = vmul.f32 1.442695, %v83_v11  ;;  %v95_v23 = vsel %vm94_vm3, %v83_v11, 0.0 }
  0xa2   :  { %v96_v24 = vsel %vm79_vm1, %v95_v23, 0.0 }
  0xa3   :  { %155 = vpow2.f32 %v84_v12 }
  0xac   :  { %v154_v16 = vpop.eup %153 }
  0xad   :  { %v51_v18 = vsel %vm44_vm0, %v154_v16, 0.0 }
  0xae   :  { %52 = vadd.xlane.f32.xlu0 %v51_v18 }
  0xb0   :  { %v156_v20 = vpop.eup %155 }
  0xb1   :  { %v86_v22 = vsel %vm79_vm1, %v156_v20, 0.0 }
  0xb2   :  { %64 = vadd.xlane.f32.xlu0 %v63_v21  ;;  %87 = vadd.xlane.f32.xlu1 %v86_v22 }
  0xb6   :  { %97 = vadd.xlane.f32.xlu0 %v96_v24 }
 0x137   :  { %v53_v26 = vpop.xlane.xlu0 %52 }
 0x138   :  { %157 = vlog2.f32 %v53_v26 }
 0x13b   :  { %v88_v27 = vpop.xlane.xlu1 %87  ;;  %v65_v29 = vpop.xlane.xlu0 %64 }
 0x13c   :  { %159 = vlog2.f32 %v88_v27 }
 0x13d   :  { %161 = vpow2.f32 %v120_v43 }
 0x13e   :  { %163 = vpow2.f32 %v125_v49 }
 0x13f   :  { %v98_v37 = vpop.xlane.xlu0 %97 }
 0x145   :  { %v158_v28 = vpop.eup %157 }
 0x146   :  { %v55_v30 = vmul.f32 0.6931472, %v158_v28 }
 0x148   :  { %v66_v32 = vsub.f32 %v55_v30, %v65_v29 }
 0x149   :  { %v160_v33 = vpop.eup %159 }
 0x14a   :  { %v67_v34 = vrot.slane %v66_v32, 4  ;;  %v90_v35 = vmul.f32 0.6931472, %v160_v33  ;;  %v162_v58 = vpop.eup %161 }
 0x14b   :  { %v164_v62 = vpop.eup %163 }
 0x14c   :  { %v68_v39 = vadd.f32 %v67_v34, %v66_v32  ;;  %v99_v40 = vsub.f32 %v90_v35, %v98_v37 }
 0x14e   :  { %v69_v41 = vrot.slane %v68_v39, 2  ;;  %v100_v42 = vrot.slane %v99_v40, 4 }
 0x150   :  { %v70_v45 = vadd.f32 %v69_v41, %v68_v39  ;;  %v101_v46 = vadd.f32 %v100_v42, %v99_v40 }
 0x152   :  { %v71_v47 = vrot.slane %v70_v45, 1  ;;  %v102_v48 = vrot.slane %v101_v46, 2 }
 0x154   :  { %v72_v51 = vadd.f32 %v71_v47, %v70_v45  ;;  %v103_v52 = vadd.f32 %v102_v48, %v101_v46 }
 0x156   :  { %v104_v53 = vrot.slane %v103_v52, 1  ;;  %v73_v54 = vadd.f32 %v72_v51, %v41_v50 }
 0x158   :  { %v105_v56 = vadd.f32 %v104_v53, %v103_v52  ;;  %75 = vst.msk [vmem:[#allocation2] sm:$0x1] %vm38_vm4, %v73_v54 }
 0x15a   :  { %v106_v57 = vadd.f32 %v105_v56, %v76_v55 }
 0x15c   :  { %107 = vst.msk [vmem:[#allocation3] sm:$0x1] %vm38_vm4, %v106_v57 }
 0x15f   :  { %v111_v59 = vld [vmem:[#allocation2] sm:$0x1] }
 0x160   :  { %v112_v60 = vmul.f32 0.125, %v111_v59 }
 0x162   :  { %v122_v61 = vmul.f32 %v162_v58, %v112_v60 }
 0x163   :  { %v113_v63 = vld [vmem:[#allocation3] sm:$0x1] }
 0x164   :  { %v114_v0 = vmul.f32 0.125, %v113_v63  ;;  %v123_v1 = vadd.f32 %v122_v61, %v116_v31 }
 0x166   :  { %v127_v2 = vmul.f32 %v164_v62, %v114_v0 }
 0x168   :  { %v128_v3 = vadd.f32 %v127_v2, %v123_v1 }
 0x16a   :  { %v129_v4 = vadd.f32 %v128_v3, %v118_v38 }
 0x16c   :  { %130 = vst.msk [vmem:[#allocation7] sm:$0x1] %vm38_vm4, %v129_v4 }
 0x16d   :  { %188 = shalt.err (!%p185_p9)
}
 0x16e   :  { %140 = dma.vmem_to_hbm [thread:$0]  %s138_s29, 16, %s275_s5, [#allocation5]  }
 0x16f   :  { %199 = dma.done.wait [#allocation5], 16  }
 0x170   :  { %200 = vsyncadd [#allocation5], 4294967280 }
 0x171   :  { %144 = vsyncpa [#allocation5], 1 }
 0x172   :  { %145 = vsyncpa [#allocation6], 1 }

</bundles_post_ra>
